<compile_context>
chip_gen: v7x
topology: tpu7x:2x2x1
jax: 0.10.0
libtpu: 0.0.40
codegen_flags: <defaults>
</compile_context>

<pallas_src>
import functools

import jax
import jax.numpy as jnp
from jax.experimental import pallas as pl
from jax.experimental.pallas import tpu as pltpu

_PAIRWISE_EPS = 1e-6  # F.pairwise_distance default eps (added to the difference)


def _contrastive_loss_kernel(o1_ref, o2_ref, lbl_ref, loss_ref, *, margin, batch, tile_rows):
    i = pl.program_id(0)

    @pl.when(i == 0)
    def _():
        loss_ref[...] = jnp.zeros_like(loss_ref)

    o1 = o1_ref[...].astype(jnp.float32)          # (TB, D)
    o2 = o2_ref[...].astype(jnp.float32)          # (TB, D)
    lbl = lbl_ref[...].astype(jnp.float32)        # (TB, 1)

    diff = o1 - o2 + _PAIRWISE_EPS                # matches pairwise_distance(x1 - x2 + eps)
    d2 = jnp.sum(diff * diff, axis=-1, keepdims=True)   # (TB, 1) squared distance
    d = jnp.sqrt(d2)                                     # euclidean distance (EUP)

    hinge = jnp.maximum(margin - d, 0.0)          # clamp(margin - d, min=0)
    per_pair = lbl * d2 + (1.0 - lbl) * (hinge * hinge)  # (TB, 1)

    # Mask padded tail rows: an unmasked pad row (garbage o1/o2, label ~ 0)
    # would silently contribute up to margin^2 through the hinge term.
    row = jax.lax.broadcasted_iota(jnp.int32, per_pair.shape, 0)
    valid = (i * tile_rows + row) < batch
    per_pair = jnp.where(valid, per_pair, 0.0)

    loss_ref[...] += jnp.sum(per_pair, axis=0, keepdims=True)

    @pl.when(i == pl.num_programs(0) - 1)
    def _():
        # torch.mean over the batch -> scalar, kept as a (1, 1) tile.
        loss_ref[...] = loss_ref[...] / jnp.float32(batch)


def _pick_tile_rows(batch, feat, itemsize):
    """Largest row-tile keeping 2 inputs x 2 pipeline buffers under ~12 MiB."""
    budget_bytes = 12 * 1024 * 1024
    per_row_bytes = 4 * feat * itemsize  # 2 inputs x double-buffered
    tb = budget_bytes // max(per_row_bytes, 1)
    tb = max(8, min(1024, (tb // 8) * 8))  # multiple of 8 (sublane constraint)
    if tb >= batch:
        return batch  # single full-batch tile (block == full dims is always legal)
    return tb


def contrastive_loss(output1, output2, label, margin=2.0, tile_rows=None):
    """Pallas TPU implementation of ContrastiveLoss.forward.

    output1, output2: (B, D) float arrays (f32 or bf16). label: (B,) 0/1 floats.
    Returns a float32 scalar loss.

    Note: for tiny B*D (like the demo shapes) the pallas_call launch overhead
    dominates and the pure-JAX reference is preferable; this wrapper always
    uses the kernel so the Pallas path is exercised.
    """
    assert output1.shape == output2.shape and output1.ndim == 2
    B, D = output1.shape
    itemsize = jnp.dtype(output1.dtype).itemsize
    lbl2d = label.reshape(B, 1).astype(jnp.float32)

    tb = tile_rows if tile_rows is not None else _pick_tile_rows(B, D, itemsize)
    if tb < B:
        assert tb % 8 == 0, "row tile must be a multiple of 8 when smaller than the batch"
    grid = (pl.cdiv(B, tb),)

    kernel = functools.partial(
        _contrastive_loss_kernel, margin=float(margin), batch=B, tile_rows=tb
    )

    cost = pl.CostEstimate(
        flops=5 * B * D,
        transcendentals=B,
        bytes_accessed=2 * B * D * itemsize + B * 4 + 4,
    )

    loss = pl.pallas_call(
        kernel,
        out_shape=jax.ShapeDtypeStruct((1, 1), jnp.float32),
        grid_spec=pltpu.PrefetchScalarGridSpec(
            num_scalar_prefetch=0,
            grid=grid,
            in_specs=[
                pl.BlockSpec((tb, D), lambda i: (i, 0)),
                pl.BlockSpec((tb, D), lambda i: (i, 0)),
                pl.BlockSpec((tb, 1), lambda i: (i, 0)),
            ],
            out_specs=pl.BlockSpec((1, 1), lambda i: (0, 0)),
        ),
        compiler_params=pltpu.CompilerParams(
            dimension_semantics=("arbitrary",),   # output is an accumulator over this axis
            vmem_limit_bytes=32 * 1024 * 1024,    # > v5e's 16 MiB default, safe on v7x's 64 MiB
        ),
        cost_estimate=cost,
    )(output1, output2, lbl2d)

    return loss[0, 0]


def _reference_contrastive_loss(output1, output2, label, margin=2.0):
    # Pure-JAX reference mirroring the PyTorch module, for verification.
    d = jnp.sqrt(
        jnp.sum((output1.astype(jnp.float32) - output2.astype(jnp.float32) + _PAIRWISE_EPS) ** 2,
                axis=-1)
    )
    return jnp.mean(label * d**2 + (1.0 - label) * jnp.maximum(margin - d, 0.0) ** 2)


if __name__ == "__main__":
    key = jax.random.PRNGKey(0)
    k1, k2, k3, k4, k5, k6 = jax.random.split(key, 6)

    # Small shapes consistent with Siamese embedding outputs (single-tile path).
    B, D = 8, 32
    output1 = jax.random.normal(k1, (B, D), dtype=jnp.float32)
    output2 = jax.random.normal(k2, (B, D), dtype=jnp.float32)
    label = jax.random.bernoulli(k3, 0.5, (B,)).astype(jnp.float32)

    loss = contrastive_loss(output1, output2, label, margin=2.0)
    jax.block_until_ready(loss)
    ref = _reference_contrastive_loss(output1, output2, label, margin=2.0)
    assert jnp.allclose(loss, ref, rtol=1e-5, atol=1e-5), (loss, ref)

    # Modest batch with a forced small tile to exercise the tiled/accumulator
    # path plus tail masking (B not a multiple of the tile).
    B2, D2 = 200, 64
    o1b = jax.random.normal(k4, (B2, D2), dtype=jnp.float32)
    o2b = jax.random.normal(k5, (B2, D2), dtype=jnp.float32)
    lblb = jax.random.bernoulli(k6, 0.5, (B2,)).astype(jnp.float32)

    loss2 = contrastive_loss(o1b, o2b, lblb, margin=2.0, tile_rows=128)
    jax.block_until_ready(loss2)
    ref2 = _reference_contrastive_loss(o1b, o2b, lblb, margin=2.0)
    assert jnp.allclose(loss2, ref2, rtol=1e-5, atol=1e-5), (loss2, ref2)

    print("KERNEL_OK")
</pallas_src>

<mosaic_0001>
module attributes {stable_mosaic.version = 11 : i64} {
  func.func @_contrastive_loss_kernel(%arg0: i32, %arg1: memref<8x32xf32, #tpu.memory_space<vmem>>, %arg2: memref<8x32xf32, #tpu.memory_space<vmem>>, %arg3: memref<8x1xf32, #tpu.memory_space<vmem>>, %arg4: memref<1x1xf32, #tpu.memory_space<vmem>>) attributes {dimension_semantics = [#tpu.dimension_semantics<arbitrary>], iteration_bounds = array<i64: 1>, scalar_prefetch = 0 : i64, scratch_operands = 0 : i64, tpu.core_type = #tpu.core_type<tc>, window_params = [{transform_indices = @transform_0, window_bounds = array<i64: 8, 32>}, {transform_indices = @transform_1, window_bounds = array<i64: 8, 32>}, {transform_indices = @transform_2, window_bounds = array<i64: 8, 1>}, {pipeline_mode = #tpu.pipeline_mode<synchronous>, transform_indices = @transform_3, window_bounds = array<i64: 1, 1>}]} {
    %c0_i32 = arith.constant 0 : i32
    %0 = arith.cmpi eq, %arg0, %c0_i32 : i32
    %1 = arith.extui %0 : i1 to i32
    %c0_i32_0 = arith.constant 0 : i32
    %2 = arith.cmpi ne, %1, %c0_i32_0 : i32
    scf.if %2 {
      %cst_19 = arith.constant 0.000000e+00 : f32
      %39 = vector.broadcast %cst_19 : f32 to vector<1x1xf32>
      %c0_20 = arith.constant 0 : index
      %c0_21 = arith.constant 0 : index
      %40 = vector.load %arg4[%c0_20, %c0_21] : memref<1x1xf32, #tpu.memory_space<vmem>>, vector<1x1xf32>
      tpu.vector_store %arg4[%c0_20, %c0_21], %39 {strides = array<i32>} : memref<1x1xf32, #tpu.memory_space<vmem>>, vector<1x1xf32>,
    } else {
    }
    %c0 = arith.constant 0 : index
    %c0_1 = arith.constant 0 : index
    %3 = vector.load %arg1[%c0, %c0_1] : memref<8x32xf32, #tpu.memory_space<vmem>>, vector<8x32xf32>
    %c0_2 = arith.constant 0 : index
    %c0_3 = arith.constant 0 : index
    %4 = vector.load %arg2[%c0_2, %c0_3] : memref<8x32xf32, #tpu.memory_space<vmem>>, vector<8x32xf32>
    %c0_4 = arith.constant 0 : index
    %c0_5 = arith.constant 0 : index
    %5 = vector.load %arg3[%c0_4, %c0_5] : memref<8x1xf32, #tpu.memory_space<vmem>>, vector<8x1xf32>
    %6 = arith.subf %3, %4 : vector<8x32xf32>
    %cst = arith.constant 9.99999997E-7 : f32
    %7 = vector.broadcast %cst : f32 to vector<8x32xf32>
    %8 = arith.addf %6, %7 : vector<8x32xf32>
    %9 = arith.mulf %8, %8 : vector<8x32xf32>
    %cst_6 = arith.constant dense<0.000000e+00> : vector<8xf32>
    %10 = vector.multi_reduction <add>, %9, %cst_6 [1] : vector<8x32xf32> to vector<8xf32>
    %11 = vector.shape_cast %10 : vector<8xf32> to vector<8x1xf32>
    %12 = math.sqrt %11 : vector<8x1xf32>
    %cst_7 = arith.constant 2.000000e+00 : f32
    %13 = vector.broadcast %cst_7 : f32 to vector<8x1xf32>
    %14 = arith.subf %13, %12 : vector<8x1xf32>
    %cst_8 = arith.constant 0.000000e+00 : f32
    %15 = vector.broadcast %cst_8 : f32 to vector<8x1xf32>
    %16 = arith.maximumf %14, %15 : vector<8x1xf32>
    %17 = arith.mulf %5, %11 : vector<8x1xf32>
    %cst_9 = arith.constant 1.000000e+00 : f32
    %18 = vector.broadcast %cst_9 : f32 to vector<8x1xf32>
    %19 = arith.subf %18, %5 : vector<8x1xf32>
    %20 = arith.mulf %16, %16 : vector<8x1xf32>
    %21 = arith.mulf %19, %20 : vector<8x1xf32>
    %22 = arith.addf %17, %21 : vector<8x1xf32>
    %23 = tpu.iota {dimensions = array<i32: 0>} : vector<8x1xi32>
    %c8_i32 = arith.constant 8 : i32
    %24 = arith.muli %arg0, %c8_i32 : i32
    %25 = vector.broadcast %24 : i32 to vector<8x1xi32>
    %26 = arith.addi %25, %23 : vector<8x1xi32>
    %c8_i32_10 = arith.constant 8 : i32
    %27 = vector.broadcast %c8_i32_10 : i32 to vector<8x1xi32>
    %28 = arith.cmpi slt, %26, %27 : vector<8x1xi32>
    %cst_11 = arith.constant 0.000000e+00 : f32
    %29 = vector.broadcast %cst_11 : f32 to vector<8x1xf32>
    %30 = arith.select %28, %22, %29 : vector<8x1xi1>, vector<8x1xf32>
    %c0_12 = arith.constant 0 : index
    %c0_13 = arith.constant 0 : index
    %31 = vector.load %arg4[%c0_12, %c0_13] : memref<1x1xf32, #tpu.memory_space<vmem>>, vector<1x1xf32>
    %cst_14 = arith.constant dense<0.000000e+00> : vector<1xf32>
    %32 = vector.multi_reduction <add>, %30, %cst_14 [0] : vector<8x1xf32> to vector<1xf32>
    %33 = vector.shape_cast %32 : vector<1xf32> to vector<1x1xf32>
    %34 = arith.addf %31, %33 : vector<1x1xf32>
    %c0_15 = arith.constant 0 : index
    %c0_16 = arith.constant 0 : index
    %35 = vector.load %arg4[%c0_15, %c0_16] : memref<1x1xf32, #tpu.memory_space<vmem>>, vector<1x1xf32>
    tpu.vector_store %arg4[%c0_15, %c0_16], %34 {strides = array<i32>} : memref<1x1xf32, #tpu.memory_space<vmem>>, vector<1x1xf32>,
    %c0_i32_17 = arith.constant 0 : i32
    %36 = arith.cmpi eq, %arg0, %c0_i32_17 : i32
    %37 = arith.extui %36 : i1 to i32
    %c0_i32_18 = arith.constant 0 : i32
    %38 = arith.cmpi ne, %37, %c0_i32_18 : i32
    scf.if %38 {
      %c0_19 = arith.constant 0 : index
      %c0_20 = arith.constant 0 : index
      %39 = vector.load %arg4[%c0_19, %c0_20] : memref<1x1xf32, #tpu.memory_space<vmem>>, vector<1x1xf32>
      %cst_21 = arith.constant 8.000000e+00 : f32
      %40 = vector.broadcast %cst_21 : f32 to vector<1x1xf32>
      %41 = arith.divf %39, %40 : vector<1x1xf32>
      %c0_22 = arith.constant 0 : index
      %c0_23 = arith.constant 0 : index
      %42 = vector.load %arg4[%c0_22, %c0_23] : memref<1x1xf32, #tpu.memory_space<vmem>>, vector<1x1xf32>
      tpu.vector_store %arg4[%c0_22, %c0_23], %41 {strides = array<i32>} : memref<1x1xf32, #tpu.memory_space<vmem>>, vector<1x1xf32>,
    } else {
    }
    return
  }
  func.func @transform_0(%arg0: i32) -> (i32, i32) {
    %c0_i32 = arith.constant 0 : i32
    %c0_i32_0 = arith.constant 0 : i32
    return %arg0, %c0_i32 : i32, i32
  }
  func.func @transform_1(%arg0: i32) -> (i32, i32) {
    %c0_i32 = arith.constant 0 : i32
    %c0_i32_0 = arith.constant 0 : i32
    return %arg0, %c0_i32 : i32, i32
  }
  func.func @transform_2(%arg0: i32) -> (i32, i32) {
    %c0_i32 = arith.constant 0 : i32
    %c0_i32_0 = arith.constant 0 : i32
    return %arg0, %c0_i32 : i32, i32
  }
  func.func @transform_3(%arg0: i32) -> (i32, i32) {
    %c0_i32 = arith.constant 0 : i32
    %c0_i32_0 = arith.constant 0 : i32
    %c0_i32_1 = arith.constant 0 : i32
    return %c0_i32, %c0_i32_0 : i32, i32
  }
}

</mosaic_0001>

<bundles_post_ra>
// kernel: tpu_custom_call.1
= control target key start
LH: loop header
LB: loop body
LE: loop exit
PB: predicated region body
PF: predicated region fallthrough
CT: control target
= control target key end

     0   :  { %8 = vsyncpa [#allocation3], 0  ;;  %s207_s0 = inlined_call_operand.vmem [shape: f32[8,32], index: 0, kind: input, shape index: {}]   ;;  %s208_s1 = inlined_call_operand.hbm [shape: f32[8,32], index: 1, kind: input, shape index: {}]   ;;  %s209_s2 = inlined_call_operand.vmem [shape: f32[8,1], index: 2, kind: input, shape index: {}]   ;;  %s210_s3 = inlined_call_operand.hbm [shape: f32[1,1], index: 3, kind: output, shape index: {}]  }
   0x1   :  { %9 = vsyncpa [#allocation4], 0  ;;  %s151_s12 = smov [#allocation2]   ;;  %s103_s16 = scalar_lea.hbm %s208_s1, 128 }
   0x2   :  { %s18_s13 = sshll.u32 %s151_s12, 4  ;;  %p104_p0 = scmp.ne.s32.totalorder %s208_s1, %s103_s16  ;;  %s19_s13 = int_to_ptr.vmem [resolvable:$true] %s18_s13 }
   0x3   :  { %p107_p1 = scmp.lt.u32.totalorder %s103_s16, %s208_s1 }
   0x5   :  { %p109_p2 = pnand %p107_p1, %p104_p0 }
   0x7   :  { %112 = shalt.err (!%p109_p2)
}
   0x8   :  { %s113_s21 = scalar_lea.vmem %s19_s13, 128  ;;  %p118_p4 = scmp.lt.s32.totalorder %s19_s13, %s19_s13 }
   0x9   :  { %p114_p3 = scmp.ne.s32.totalorder %s19_s13, %s113_s21  ;;  %p119_p5 = scmp.lt.s32.totalorder %s113_s21, %s113_s21 }
   0xb   :  { %p120_p6 = por %p119_p5, %p118_p4 }
   0xd   :  { %p121_p7 = pnand %p120_p6, %p114_p3 }
   0xf   :  { %124 = shalt.err (!%p121_p7)
}
  0x10   :  { %21 = dma.hbm_to_vmem [thread:$0]  %s208_s1, 128, %s19_s13, [#allocation3]  }
  0x11   :  { %147 = dma.done.wait [#allocation3], 128  }
  0x12   :  { %148 = vsyncadd [#allocation3], 4294967168  ;;  %v33_v0 = vld [vmem:[%s207_s0] sm:$0xff]  ;;  %vm39_vm0 = vcmask 261120   ;;  %vm31_vm1 = vcmask 0   ;;  %v152_v6 = vmov 0.0  }
  0x13   :  { %v34_v1 = vld [vmem:[#allocation2] sm:$0xff]  ;;  %32 = vst.msk [vmem:[#allocation5] sm:$0x1] %vm31_vm1, %v152_v6  ;;  %vm65_vm4 = vcmask 7168   ;;  %s153_s26 = smov [#allocation5]  }
  0x14   :  { %v36_v2 = vsub.f32 %v33_v0, %v34_v1  ;;  %v35_v14 = vld [vmem:[%s209_s2] sm:$0xff]  ;;  %s89_s2 = sshll.u32 %s153_s26, 4  ;;  %s90_s2 = int_to_ptr.vmem [resolvable:$true] %s89_s2 }
  0x15   :  { %v53_v16 = vsub.f32 1.0, %v35_v14  ;;  %s125_s27 = scalar_lea.vmem %s90_s2, 16  ;;  %s129_s28 = scalar_lea.vmem %s90_s2, 32 }
  0x16   :  { %v37_v3 = vadd.f32 1e-06, %v36_v2  ;;  %p126_p8 = scmp.ne.s32.totalorder %s90_s2, %s125_s27  ;;  %p130_p9 = scmp.lt.s32.totalorder %s90_s2, %s90_s2 }
  0x17   :  { %p131_p10 = scmp.lt.s32.totalorder %s129_s28, %s125_s27 }
  0x18   :  { %v38_v4 = vmul.f32 %v37_v3, %v37_v3 }
  0x19   :  { %p132_p11 = por %p131_p10, %p130_p9 }
  0x1a   :  { %v40_v5 = vsel %vm39_vm0, %v38_v4, 0.0  ;;  %v64_v27 = vld [vmem:[#allocation5] sm:$0x1] }
  0x1b   :  { %41 = vadd.xlane.f32.xlu0 %v40_v5  ;;  %p133_p12 = pnand %p132_p11, %p126_p8 }
  0xa8   :  { %v42_v7 = vpop.xlane.xlu0 %41 }
  0xa9   :  { %101 = vrsqrt.f32 %v42_v7  ;;  %vm45_vm2 = vcmp.eq.f32.partialorder %v42_v7, inf  ;;  %v48_v10 = vand.u32 2147483648, %v42_v7  ;;  %vm47_vm3 = vcmp.eq.f32.partialorder %v42_v7, 0.0 }
  0xaa   :  { %v52_v18 = vmul.f32 %v42_v7, %v35_v14 }
  0xb3   :  { %v102_v8 = vpop.eup %101 }
  0xb4   :  { %v44_v9 = vmul.f32 %v102_v8, %v42_v7 }
  0xb6   :  { %v46_v11 = vsel %vm45_vm2, %v42_v7, %v44_v9 }
  0xb7   :  { %v49_v12 = vsel %vm47_vm3, %v48_v10, %v46_v11 }
  0xb8   :  { %v50_v13 = vsub.f32 2.0, %v49_v12 }
  0xba   :  { %v51_v15 = vmax.f32 %v50_v13, 0.0 }
  0xbc   :  { %v54_v17 = vmul.f32 %v51_v15, %v51_v15 }
  0xbe   :  { %v55_v19 = vmul.f32 %v54_v17, %v53_v16 }
  0xc0   :  { %v56_v20 = vadd.f32 %v55_v19, %v52_v18 }
  0xc2   :  { %v66_v21 = vsel %vm65_vm4, %v56_v20, 0.0 }
  0xc3   :  { %v67_v22 = vrot.slane %v66_v21, 4 }
  0xc5   :  { %v68_v23 = vadd.f32 %v67_v22, %v66_v21 }
  0xc7   :  { %v69_v24 = vrot.slane %v68_v23, 2 }
  0xc9   :  { %v70_v25 = vadd.f32 %v69_v24, %v68_v23 }
  0xcb   :  { %v71_v26 = vrot.slane %v70_v25, 1 }
  0xcd   :  { %v72_v28 = vadd.f32 %v71_v26, %v70_v25 }
  0xcf   :  { %v73_v29 = vadd.f32 %v72_v28, %v64_v27 }
  0xd1   :  { %75 = vst.msk [vmem:[#allocation5] sm:$0x1] %vm31_vm1, %v73_v29 }
  0xd8   :  { %v79_v30 = vld [vmem:[#allocation5] sm:$0x1] }
  0xd9   :  { %v81_v31 = vmul.f32 0.125, %v79_v30 }
  0xdb   :  { %82 = vst.msk [vmem:[#allocation5] sm:$0x1] %vm31_vm1, %v81_v31 }
  0xdc   :  { %136 = shalt.err (!%p133_p12)
}
  0xdd   :  { %s137_s4 = scalar_lea.hbm %s210_s3, 16 }
  0xde   :  { %p138_p13 = scmp.ne.s32.totalorder %s210_s3, %s137_s4  ;;  %p141_p0 = scmp.lt.u32.totalorder %s137_s4, %s210_s3 }
  0xe0   :  { %p143_p1 = pnand %p141_p0, %p138_p13 }
  0xe2   :  { %146 = shalt.err (!%p143_p1)
}
  0xe3   :  { %92 = dma.vmem_to_hbm [thread:$0]  %s90_s2, 16, %s210_s3, [#allocation4]  }
  0xe4   :  { %149 = dma.done.wait [#allocation4], 16  }
  0xe5   :  { %150 = vsyncadd [#allocation4], 4294967280 }
  0xe6   :  { %96 = vsyncpa [#allocation3], 1 }
  0xe7   :  { %97 = vsyncpa [#allocation4], 1 }

</bundles_post_ra>
